<compile_context>
chip_gen: v6e
topology: v6e:2x2x1
jax: 0.10.0
libtpu: 0.0.40
codegen_flags: <defaults>
</compile_context>

<pallas_src>
import functools
import math

import jax
import jax.numpy as jnp
from jax.experimental import pallas as pl
from jax.experimental.pallas import tpu as pltpu

_LANES = 128


def _sublane_tile(itemsize):
    # Native sublane packing: 8 rows for 32-bit, 16 for 16-bit, 32 for 8-bit.
    return {4: 8, 2: 16, 1: 32}.get(int(itemsize), 8)


def _dice_kernel(x_ref, t_ref, inter_ref, den_ref, *, rows_total, rows_tile,
                 num_k, mask_from_block):
    s = pl.program_id(0)          # row-split (across TensorCores on v7x)
    k = pl.program_id(1)          # reduction steps within a split

    @pl.when(k == 0)
    def _init():
        inter_ref[...] = jnp.zeros_like(inter_ref)
        den_ref[...] = jnp.zeros_like(den_ref)

    x = x_ref[...].astype(jnp.float32)   # (N, rows_tile, 128), cast in-register
    t = t_ref[...].astype(jnp.float32)

    prod = x * t        # intersection terms
    ssum = x + t        # merged denominator terms (input_sum + target_sum)

    def _accumulate(p, q):
        # Lane-dense per-sample partial sums accumulated in the VMEM-resident
        # output blocks across the "arbitrary" reduction axis.
        inter_ref[0] += jnp.sum(p, axis=1)
        den_ref[0] += jnp.sum(q, axis=1)

    if mask_from_block is None:
        _accumulate(prod, ssum)
    else:
        gblk = s * num_k + k

        @pl.when(gblk < mask_from_block)      # steady-state fast path
        def _fast():
            _accumulate(prod, ssum)

        @pl.when(gblk >= mask_from_block)     # ragged / phantom blocks only
        def _ragged():
            row = jax.lax.broadcasted_iota(jnp.int32, prod.shape, dimension=1)
            valid = (row + gblk * rows_tile) < rows_total
            _accumulate(jnp.where(valid, prod, 0.0),
                        jnp.where(valid, ssum, 0.0))


@jax.jit
def dice_loss(inp, target):
    """Pallas implementation of DiceLoss.forward(input, target).

    inp, target: (N, C, H, W) arrays (any float dtype); returns an f32 scalar.
    """
    assert inp.shape == target.shape, (inp.shape, target.shape)
    n = inp.shape[0]
    d = math.prod(inp.shape[1:])

    x2 = inp.reshape(n, d)          # native dtype; free reshape (no HBM copy)
    t2 = target.reshape(n, d)

    rows = d // _LANES
    d_main = rows * _LANES
    tail = d - d_main

    inter = jnp.zeros((n,), jnp.float32)
    den = jnp.zeros((n,), jnp.float32)

    if rows > 0:
        if tail == 0:
            xb = x2.reshape(n, rows, _LANES)           # zero-copy fold
            tb = t2.reshape(n, rows, _LANES)
        else:
            # Stream only the 128-aligned bulk; the tiny tail is reduced below.
            xb = x2[:, :d_main].reshape(n, rows, _LANES)
            tb = t2[:, :d_main].reshape(n, rows, _LANES)

        isx, ist = xb.dtype.itemsize, tb.dtype.itemsize
        sub = max(_sublane_tile(isx), _sublane_tile(ist))

        if rows <= 2 * sub:
            # Tiny problem: one full-extent block, single grid step.
            n_splits, rows_tile = 1, rows
        else:
            n_splits = 2                                # engage both v7x TCs
            target_bytes = 2 << 20                      # ~1 MiB per input block
            rows_budget = max(sub, target_bytes // (n * _LANES * (isx + ist)))
            rows_steps = pl.cdiv(rows, n_splits * 4)    # >= ~4 k-steps per core
            rt = min(rows_budget, max(sub, rows_steps))
            rows_tile = max(sub, (rt // sub) * sub)
            rows_tile = min(rows_tile, (rows // sub) * sub)

        blocks_total = pl.cdiv(rows, rows_tile)
        num_k = pl.cdiv(blocks_total, n_splits)
        blocks_padded = n_splits * num_k
        ragged = (rows % rows_tile) != 0
        if ragged:
            mask_from_block = blocks_total - 1
        elif blocks_padded > blocks_total:
            mask_from_block = blocks_total
        else:
            mask_from_block = None

        last_blk = blocks_total - 1
        if blocks_padded > blocks_total:
            # At most one phantom block; clamp its read in-bounds (it is fully
            # masked to zero in the kernel based on its *logical* row range).
            def in_idx(s, k):
                return (0, jnp.minimum(s * num_k + k, last_blk), 0)
        else:
            def in_idx(s, k):
                return (0, s * num_k + k, 0)

        # VMEM accounting: 2 native-dtype double-buffered inputs + f32
        # temporaries (x/t casts, prod, ssum) + accumulators, with headroom,
        # clamped to the chip's physical VMEM capacity.
        blk_native = n * rows_tile * _LANES * (isx + ist)
        blk_f32 = n * rows_tile * _LANES * 4
        est = 2 * blk_native + 4 * blk_f32 + 2 * n_splits * n * _LANES * 4 + (2 << 20)
        try:
            cap = int(pltpu.get_tpu_info().vmem_capacity_bytes)
        except Exception:
            cap = 64 * 1024 * 1024
        vmem_limit = int(min(cap - (16 << 20), max(32 << 20, 2 * est)))

        kernel = functools.partial(
            _dice_kernel, rows_total=rows, rows_tile=rows_tile,
            num_k=num_k, mask_from_block=mask_from_block)

        inter_p, den_p = pl.pallas_call(
            kernel,
            out_shape=(
                jax.ShapeDtypeStruct((n_splits, n, _LANES), jnp.float32),
                jax.ShapeDtypeStruct((n_splits, n, _LANES), jnp.float32),
            ),
            grid_spec=pltpu.PrefetchScalarGridSpec(
                num_scalar_prefetch=0,
                grid=(n_splits, num_k),
                in_specs=[
                    pl.BlockSpec((n, rows_tile, _LANES), in_idx),
                    pl.BlockSpec((n, rows_tile, _LANES), in_idx),
                ],
                out_specs=[
                    pl.BlockSpec((1, n, _LANES), lambda s, k: (s, 0, 0)),
                    pl.BlockSpec((1, n, _LANES), lambda s, k: (s, 0, 0)),
                ],
            ),
            compiler_params=pltpu.CompilerParams(
                dimension_semantics=("parallel", "arbitrary"),
                vmem_limit_bytes=vmem_limit,
            ),
        )(xb, tb)

        # Tiny O(N*128) epilogue: combine splits + cross-lane reduce.
        inter = inter_p.sum(axis=(0, 2))
        den = den_p.sum(axis=(0, 2))

    if tail > 0 or rows == 0:
        # <=127-element per-sample tail (or the whole thing if D < 128).
        xt = x2[:, d_main:].astype(jnp.float32)
        tt = t2[:, d_main:].astype(jnp.float32)
        inter = inter + (xt * tt).sum(axis=1)
        den = den + (xt + tt).sum(axis=1)

    smooth = jnp.float32(1.0)
    dice = 2.0 * (inter + smooth) / (den + smooth)
    return (1.0 - jnp.sum(dice) / jnp.float32(n)).astype(jnp.float32)


def dice_loss_ref(inp, target):
    """Pure-JAX reference mirroring the PyTorch module."""
    n = target.shape[0]
    smooth = 1.0
    xf = inp.reshape(n, -1).astype(jnp.float32)
    tf = target.reshape(n, -1).astype(jnp.float32)
    inter = (xf * tf).sum(1)
    dice = 2.0 * (inter + smooth) / (xf.sum(1) + tf.sum(1) + smooth)
    return 1.0 - dice.sum() / n


if __name__ == "__main__":
    key = jax.random.PRNGKey(0)
    ks = jax.random.split(key, 10)

    def check(inp, tgt, label):
        out = jax.block_until_ready(dice_loss(inp, tgt))
        ref = jax.block_until_ready(dice_loss_ref(inp, tgt))
        assert jnp.allclose(out, ref, rtol=1e-4, atol=1e-4), (label, out, ref)

    # Case 1: canonical NCHW, f32, D a multiple of 128 (zero-copy fold).
    inp1 = jax.nn.sigmoid(jax.random.normal(ks[0], (2, 4, 16, 16), jnp.float32))
    tgt1 = (jax.random.uniform(ks[1], (2, 4, 16, 16)) > 0.5).astype(jnp.float32)
    check(inp1, tgt1, "case1")

    # Case 2: odd batch, D not a multiple of 128 (bulk kernel + wrapper tail).
    inp2 = jax.nn.sigmoid(jax.random.normal(ks[2], (3, 4, 18, 18), jnp.float32))
    tgt2 = (jax.random.uniform(ks[3], (3, 4, 18, 18)) > 0.5).astype(jnp.float32)
    check(inp2, tgt2, "case2")

    # Case 3: bf16 inputs streamed natively (half HBM traffic, no f32 copy).
    inp3 = jax.nn.sigmoid(jax.random.normal(ks[4], (2, 8, 16, 16))).astype(jnp.bfloat16)
    tgt3 = (jax.random.uniform(ks[5], (2, 8, 16, 16)) > 0.5).astype(jnp.bfloat16)
    check(inp3, tgt3, "case3")

    # Case 4: larger D -> multi-step pipelined reduction over both row splits.
    inp4 = jax.nn.sigmoid(jax.random.normal(ks[6], (2, 4, 128, 128), jnp.float32))
    tgt4 = (jax.random.uniform(ks[7], (2, 4, 128, 128)) > 0.5).astype(jnp.float32)
    check(inp4, tgt4, "case4")

    # Case 5: ragged last row block + phantom block (clamped index map + mask).
    inp5 = jax.nn.sigmoid(jax.random.normal(ks[8], (2, 3, 40, 40), jnp.float32))
    tgt5 = (jax.random.uniform(ks[9], (2, 3, 40, 40)) > 0.5).astype(jnp.float32)
    check(inp5, tgt5, "case5")

    print("KERNEL_OK")
</pallas_src>

<mosaic_0001>
module attributes {stable_mosaic.version = 11 : i64} {
  func.func @_dice_kernel(%arg0: i32, %arg1: i32, %arg2: memref<2x8x128xf32, #tpu.memory_space<vmem>>, %arg3: memref<2x8x128xf32, #tpu.memory_space<vmem>>, %arg4: memref<1x2x128xf32, #tpu.memory_space<vmem>>, %arg5: memref<1x2x128xf32, #tpu.memory_space<vmem>>) attributes {dimension_semantics = [#tpu.dimension_semantics<parallel>, #tpu.dimension_semantics<arbitrary>], iteration_bounds = array<i64: 1, 1>, scalar_prefetch = 0 : i64, scratch_operands = 0 : i64, tpu.core_type = #tpu.core_type<tc>, window_params = [{transform_indices = @transform_0, window_bounds = array<i64: 2, 8, 128>}, {transform_indices = @transform_1, window_bounds = array<i64: 2, 8, 128>}, {transform_indices = @transform_2, window_bounds = array<i64: 1, 2, 128>}, {transform_indices = @transform_3, window_bounds = array<i64: 1, 2, 128>}]} {
    %c0_i32 = arith.constant 0 : i32
    %0 = arith.cmpi eq, %arg1, %c0_i32 : i32
    %1 = arith.extui %0 : i1 to i32
    %c0_i32_0 = arith.constant 0 : i32
    %2 = arith.cmpi ne, %1, %c0_i32_0 : i32
    scf.if %2 {
      %cst_19 = arith.constant 0.000000e+00 : f32
      %21 = vector.broadcast %cst_19 : f32 to vector<1x2x128xf32>
      %c0_20 = arith.constant 0 : index
      %c0_21 = arith.constant 0 : index
      %c0_22 = arith.constant 0 : index
      %22 = vector.load %arg4[%c0_20, %c0_21, %c0_22] : memref<1x2x128xf32, #tpu.memory_space<vmem>>, vector<1x2x128xf32>
      tpu.vector_store %arg4[%c0_20, %c0_21, %c0_22], %21 {strides = array<i32>} : memref<1x2x128xf32, #tpu.memory_space<vmem>>, vector<1x2x128xf32>,
      %cst_23 = arith.constant 0.000000e+00 : f32
      %23 = vector.broadcast %cst_23 : f32 to vector<1x2x128xf32>
      %c0_24 = arith.constant 0 : index
      %c0_25 = arith.constant 0 : index
      %c0_26 = arith.constant 0 : index
      %24 = vector.load %arg5[%c0_24, %c0_25, %c0_26] : memref<1x2x128xf32, #tpu.memory_space<vmem>>, vector<1x2x128xf32>
      tpu.vector_store %arg5[%c0_24, %c0_25, %c0_26], %23 {strides = array<i32>} : memref<1x2x128xf32, #tpu.memory_space<vmem>>, vector<1x2x128xf32>,
    } else {
    }
    %c0 = arith.constant 0 : index
    %c0_1 = arith.constant 0 : index
    %c0_2 = arith.constant 0 : index
    %3 = vector.load %arg2[%c0, %c0_1, %c0_2] : memref<2x8x128xf32, #tpu.memory_space<vmem>>, vector<2x8x128xf32>
    %c0_3 = arith.constant 0 : index
    %c0_4 = arith.constant 0 : index
    %c0_5 = arith.constant 0 : index
    %4 = vector.load %arg3[%c0_3, %c0_4, %c0_5] : memref<2x8x128xf32, #tpu.memory_space<vmem>>, vector<2x8x128xf32>
    %5 = arith.mulf %3, %4 : vector<2x8x128xf32>
    %6 = arith.addf %3, %4 : vector<2x8x128xf32>
    %c0_6 = arith.constant 0 : index
    %c0_7 = arith.constant 0 : index
    %c0_8 = arith.constant 0 : index
    %7 = vector.load %arg4[%c0_6, %c0_7, %c0_8] : memref<1x2x128xf32, #tpu.memory_space<vmem>>, vector<1x2x128xf32>
    %8 = vector.shape_cast %7 : vector<1x2x128xf32> to vector<2x128xf32>
    %cst = arith.constant dense<0.000000e+00> : vector<2x128xf32>
    %9 = vector.multi_reduction <add>, %5, %cst [1] : vector<2x8x128xf32> to vector<2x128xf32>
    %10 = arith.addf %8, %9 : vector<2x128xf32>
    %c0_9 = arith.constant 0 : index
    %c0_10 = arith.constant 0 : index
    %c0_11 = arith.constant 0 : index
    %11 = vector.load %arg4[%c0_9, %c0_10, %c0_11] : memref<1x2x128xf32, #tpu.memory_space<vmem>>, vector<1x2x128xf32>
    %12 = vector.shape_cast %11 : vector<1x2x128xf32> to vector<2x128xf32>
    %13 = vector.shape_cast %10 : vector<2x128xf32> to vector<1x2x128xf32>
    tpu.vector_store %arg4[%c0_9, %c0_10, %c0_11], %13 {strides = array<i32>} : memref<1x2x128xf32, #tpu.memory_space<vmem>>, vector<1x2x128xf32>,
    %c0_12 = arith.constant 0 : index
    %c0_13 = arith.constant 0 : index
    %c0_14 = arith.constant 0 : index
    %14 = vector.load %arg5[%c0_12, %c0_13, %c0_14] : memref<1x2x128xf32, #tpu.memory_space<vmem>>, vector<1x2x128xf32>
    %15 = vector.shape_cast %14 : vector<1x2x128xf32> to vector<2x128xf32>
    %cst_15 = arith.constant dense<0.000000e+00> : vector<2x128xf32>
    %16 = vector.multi_reduction <add>, %6, %cst_15 [1] : vector<2x8x128xf32> to vector<2x128xf32>
    %17 = arith.addf %15, %16 : vector<2x128xf32>
    %c0_16 = arith.constant 0 : index
    %c0_17 = arith.constant 0 : index
    %c0_18 = arith.constant 0 : index
    %18 = vector.load %arg5[%c0_16, %c0_17, %c0_18] : memref<1x2x128xf32, #tpu.memory_space<vmem>>, vector<1x2x128xf32>
    %19 = vector.shape_cast %18 : vector<1x2x128xf32> to vector<2x128xf32>
    %20 = vector.shape_cast %17 : vector<2x128xf32> to vector<1x2x128xf32>
    tpu.vector_store %arg5[%c0_16, %c0_17, %c0_18], %20 {strides = array<i32>} : memref<1x2x128xf32, #tpu.memory_space<vmem>>, vector<1x2x128xf32>,
    return
  }
  func.func @transform_0(%arg0: i32, %arg1: i32) -> (i32, i32, i32) {
    %c1_i32 = arith.constant 1 : i32
    %0 = arith.muli %arg0, %c1_i32 : i32
    %1 = arith.addi %0, %arg1 : i32
    %c0_i32 = arith.constant 0 : i32
    %c0_i32_0 = arith.constant 0 : i32
    %c0_i32_1 = arith.constant 0 : i32
    return %c0_i32, %1, %c0_i32_0 : i32, i32, i32
  }
  func.func @transform_1(%arg0: i32, %arg1: i32) -> (i32, i32, i32) {
    %c1_i32 = arith.constant 1 : i32
    %0 = arith.muli %arg0, %c1_i32 : i32
    %1 = arith.addi %0, %arg1 : i32
    %c0_i32 = arith.constant 0 : i32
    %c0_i32_0 = arith.constant 0 : i32
    %c0_i32_1 = arith.constant 0 : i32
    return %c0_i32, %1, %c0_i32_0 : i32, i32, i32
  }
  func.func @transform_2(%arg0: i32, %arg1: i32) -> (i32, i32, i32) {
    %c0_i32 = arith.constant 0 : i32
    %c0_i32_0 = arith.constant 0 : i32
    %c0_i32_1 = arith.constant 0 : i32
    return %arg0, %c0_i32, %c0_i32_0 : i32, i32, i32
  }
  func.func @transform_3(%arg0: i32, %arg1: i32) -> (i32, i32, i32) {
    %c0_i32 = arith.constant 0 : i32
    %c0_i32_0 = arith.constant 0 : i32
    %c0_i32_1 = arith.constant 0 : i32
    return %arg0, %c0_i32, %c0_i32_0 : i32, i32, i32
  }
}

</mosaic_0001>

<bundles_post_ra>
// kernel: dice_loss.1
= control target key start
LH: loop header
LB: loop body
LE: loop exit
PB: predicated region body
PF: predicated region fallthrough
CT: control target
= control target key end

     0   :  { %v121_v0 = vmov 0.0   ;;  %vm76_vm0 = vcmask 1041409   ;;  %s172_s2 = inlined_call_operand.vmem [shape: f32[1,2,128], index: 2, kind: output, shape index: {0}]   ;;  %s173_s3 = inlined_call_operand.vmem [shape: f32[1,2,128], index: 3, kind: output, shape index: {1}]   ;;  %s174_s0 = inlined_call_operand.vmem [shape: f32[2,8,128], index: 0, kind: input, shape index: {}]   ;;  %s175_s1 = inlined_call_operand.vmem [shape: f32[2,8,128], index: 1, kind: input, shape index: {}]  }
   0x1   :  { %51 = vst [vmem:[%s172_s2] sm:$0x3] %v121_v0  ;;  %52 = vst [vmem:[%s173_s3] sm:$0x3] %v121_v0  ;;  %v53_v1 = vld [vmem:[%s174_s0] sm:$0xff]  ;;  %v54_v2 = vld [vmem:[%s174_s0 + $0x8] sm:$0xff] }
   0x2   :  { %v55_v3 = vld [vmem:[%s175_s1] sm:$0xff]  ;;  %v56_v4 = vld [vmem:[%s175_s1 + $0x8] sm:$0xff] }
   0x3   :  { %v57_v5 = vmul.f32 %v55_v3, %v53_v1  ;;  %v59_v6 = vadd.f32 %v55_v3, %v53_v1  ;;  %v58_v7 = vmul.f32 %v56_v4, %v54_v2  ;;  %v60_v8 = vadd.f32 %v56_v4, %v54_v2 }
   0x5   :  { %v62_v9 = vrot.slane %v57_v5, 4  ;;  %v82_v10 = vrot.slane %v59_v6, 4  ;;  %v68_v11 = vrot.slane %v58_v7, 4  ;;  %v88_v12 = vrot.slane %v60_v8, 4 }
   0x7   :  { %v63_v13 = vadd.f32 %v62_v9, %v57_v5  ;;  %v83_v14 = vadd.f32 %v82_v10, %v59_v6  ;;  %v69_v15 = vadd.f32 %v68_v11, %v58_v7  ;;  %v89_v16 = vadd.f32 %v88_v12, %v60_v8 }
   0x8   :  { %v61_v31 = vld [vmem:[%s172_s2] sm:$0x3] }
   0x9   :  { %v64_v17 = vrot.slane %v63_v13, 2  ;;  %v84_v18 = vrot.slane %v83_v14, 2  ;;  %v70_v19 = vrot.slane %v69_v15, 2  ;;  %v90_v20 = vrot.slane %v89_v16, 2  ;;  %v81_v33 = vld [vmem:[%s173_s3] sm:$0x3] }
   0xb   :  { %v65_v21 = vadd.f32 %v64_v17, %v63_v13  ;;  %v85_v22 = vadd.f32 %v84_v18, %v83_v14  ;;  %v71_v23 = vadd.f32 %v70_v19, %v69_v15  ;;  %v91_v24 = vadd.f32 %v90_v20, %v89_v16 }
   0xd   :  { %v66_v25 = vrot.slane %v65_v21, 1  ;;  %v86_v26 = vrot.slane %v85_v22, 1  ;;  %v72_v27 = vrot.slane %v71_v23, 1  ;;  %v92_v28 = vrot.slane %v91_v24, 1 }
   0xf   :  { %v67_v29 = vadd.f32 %v66_v25, %v65_v21  ;;  %v87_v30 = vadd.f32 %v86_v26, %v85_v22  ;;  %v73_v32 = vadd.f32 %v72_v27, %v71_v23  ;;  %v93_v34 = vadd.f32 %v92_v28, %v91_v24 }
  0x11   :  { %v77_v35 = vsel %vm76_vm0, %v73_v32, %v67_v29  ;;  %v96_v36 = vsel %vm76_vm0, %v93_v34, %v87_v30 }
  0x12   :  { %v79_v37 = vadd.f32 %v77_v35, %v61_v31  ;;  %v98_v38 = vadd.f32 %v96_v36, %v81_v33 }
  0x14   :  { %80 = vst [vmem:[%s172_s2] sm:$0x3] %v79_v37  ;;  %99 = vst [vmem:[%s173_s3] sm:$0x3] %v98_v38 }

</bundles_post_ra>
